<compile_context>
chip_gen: v7x
topology: tpu7x:2x2x1
jax: 0.10.0
libtpu: 0.0.40
codegen_flags: <defaults>
</compile_context>

<pallas_src>
import math

import jax
import jax.numpy as jnp
from jax.experimental import pallas as pl
from jax.experimental.pallas import tpu as pltpu

EPS = 1e-20

# Per-block VMEM budget (bytes) for ONE input tile.  Double-buffered in + out
# tiles => ~4x this resident, i.e. ~32 MiB: safe on v5e/v6e (128 MiB VMEM)
# AND v7x (64 MiB), while keeping each grid step >~2.5 us of HBM traffic even
# at v7x bandwidth so the per-step overhead stays <7%.
_BLOCK_BUDGET_BYTES = 8 << 20


def _normalizer_kernel(x_ref, mean_ref, std_ref, o_ref):
    # Compute in f32 regardless of storage dtype (v5e has no bf16 VALU; the
    # VPU work hides completely under the DMA) and cast explicitly on store.
    x = x_ref[...].astype(jnp.float32)
    mean = mean_ref[...].astype(jnp.float32)
    std = std_ref[...].astype(jnp.float32)
    # Hoisted per-feature reciprocal: feat_tile divides instead of
    # row_tile*feat_tile divides.  Exact (not approx) to keep rtol=1e-6.
    inv = 1.0 / (std + EPS)                          # (1, feat_tile)
    o_ref[...] = ((x - mean) * inv).astype(o_ref.dtype)


def _sublane_multiple(itemsize):
    # Sub-32-bit dtypes pack along sublanes: 8 rows/vreg for 4-byte dtypes,
    # 16 for 2-byte, 32 for 1-byte.  Aligning the row tile avoids packed-row
    # relayout / partially-filled vregs on the store path.
    if itemsize >= 4:
        return 8
    if itemsize == 2:
        return 16
    return 32


def _pick_tiles(rows_p, feat_p, itemsize, budget_bytes=_BLOCK_BUDGET_BYTES):
    """Pick (row_tile, feat_tile). `feat_p` is always a multiple of 128 here.

    The VMEM budget is enforced on every path (no divisor fallback); ragged
    last blocks are handled by pl.cdiv grids (Pallas masks them)."""
    sub = _sublane_multiple(itemsize)
    # Feature tile: largest multiple of 128 such that `sub` rows still fit.
    ft_cap = budget_bytes // max(1, sub * itemsize)
    feat_tile = max(128, (ft_cap // 128) * 128)
    feat_tile = min(feat_tile, feat_p)
    # Row tile: largest multiple of `sub` rows that fits at this feat_tile.
    rt_cap = budget_bytes // max(1, feat_tile * itemsize)
    row_tile = max(sub, (rt_cap // sub) * sub)
    # May drop below `sub` only when rows_p < sub, i.e. the full dim (allowed).
    row_tile = min(row_tile, rows_p)
    return row_tile, feat_tile


def normalizer(x, mean, std):
    """x: (B, S, F); mean/std: (F,). Returns (x - mean) / (std + eps)."""
    B, S, F = x.shape
    rows = B * S
    itemsize = jnp.dtype(x.dtype).itemsize

    # --- Lane-dense packing -------------------------------------------------
    g = 1 if F % 128 == 0 else 128 // math.gcd(F, 128)
    Fp = F * g                                   # = lcm(F, 128): multiple of 128

    x2d = x.reshape(rows, F)
    pad_rows = (-rows) % g                       # pad instead of masked-store path
    if pad_rows:
        x2d = jnp.pad(x2d, ((0, pad_rows), (0, 0)))
    rows_padded = rows + pad_rows
    rows_p = rows_padded // g
    x2 = x2d.reshape(rows_p, Fp)

    mean2 = jnp.tile(mean.reshape(1, F), (1, g))   # (1, Fp), layout-only tile
    std2 = jnp.tile(std.reshape(1, F), (1, g))     # (1, Fp)

    # --- Tiling / grid -------------------------------------------------------
    row_tile, feat_tile = _pick_tiles(rows_p, Fp, itemsize)
    grid = (pl.cdiv(rows_p, row_tile), pl.cdiv(Fp, feat_tile))

    # VMEM limit derived from actual usage (never claim all of v7x's 64 MiB):
    # double-buffered in + out tiles plus double-buffered mean/std blocks.
    stat_item = jnp.dtype(mean2.dtype).itemsize
    needed = (2 * 2 * row_tile * feat_tile * itemsize
              + 2 * 2 * feat_tile * stat_item)
    vmem_limit = int(min(max(needed + (4 << 20), 16 << 20), 48 << 20))

    out2 = pl.pallas_call(
        _normalizer_kernel,
        out_shape=jax.ShapeDtypeStruct((rows_p, Fp), x.dtype),
        grid_spec=pltpu.PrefetchScalarGridSpec(
            num_scalar_prefetch=0,
            grid=grid,
            in_specs=[
                pl.BlockSpec((row_tile, feat_tile), lambda i, j: (i, j)),
                pl.BlockSpec((1, feat_tile), lambda i, j: (0, j)),  # resident
                pl.BlockSpec((1, feat_tile), lambda i, j: (0, j)),  # resident
            ],
            out_specs=pl.BlockSpec((row_tile, feat_tile), lambda i, j: (i, j)),
        ),
        compiler_params=pltpu.CompilerParams(
            # No reduction axes: every grid point writes a disjoint output
            # block, so both axes are megacore-shardable (no-op on v5e/v6e,
            # splits the bandwidth-bound work across v7x's two TCs).
            dimension_semantics=("parallel", "parallel"),
            vmem_limit_bytes=vmem_limit,
        ),
    )(x2, mean2, std2)

    out = out2.reshape(rows_padded, F)
    if pad_rows:
        out = out[:rows]
    return out.reshape(B, S, F)


if __name__ == "__main__":
    key = jax.random.PRNGKey(0)
    k_x, k_m, k_s = jax.random.split(key, 3)

    # Small shapes consistent with the module: (batch, seq, feature).
    B, S, F = 2, 8, 32
    x = jax.random.normal(k_x, (B, S, F), dtype=jnp.float32)
    # deterministic synthetic "dataset statistics" (per-feature mean / std)
    mean = jax.random.normal(k_m, (F,), dtype=jnp.float32) * 0.5
    std = jax.random.uniform(k_s, (F,), dtype=jnp.float32) * 2.0 + 0.1

    out = jax.block_until_ready(normalizer(x, mean, std))
    ref = (x - mean[None, None, :]) / (std[None, None, :] + EPS)
    assert out.shape == x.shape and out.dtype == x.dtype
    assert jnp.allclose(out, ref, rtol=1e-6, atol=1e-6)

    # Also exercise the padded lane-dense path (F not a multiple of 128 and
    # rows not a multiple of the packing factor g).
    B2, S2, F2 = 3, 5, 80          # g = 8, rows = 15 -> one padded row
    xb = jax.random.normal(k_x, (B2, S2, F2), dtype=jnp.float32)
    mb = jax.random.normal(k_m, (F2,), dtype=jnp.float32) * 0.5
    sb = jax.random.uniform(k_s, (F2,), dtype=jnp.float32) * 2.0 + 0.1
    outb = jax.block_until_ready(normalizer(xb, mb, sb))
    refb = (xb - mb[None, None, :]) / (sb[None, None, :] + EPS)
    assert outb.shape == xb.shape and outb.dtype == xb.dtype
    assert jnp.allclose(outb, refb, rtol=1e-6, atol=1e-6)

    print("KERNEL_OK")
</pallas_src>

<mosaic_0001>
module attributes {stable_mosaic.version = 11 : i64} {
  func.func @_normalizer_kernel(%arg0: i32, %arg1: i32, %arg2: memref<4x128xf32, #tpu.memory_space<vmem>>, %arg3: memref<1x128xf32, #tpu.memory_space<vmem>>, %arg4: memref<1x128xf32, #tpu.memory_space<vmem>>, %arg5: memref<4x128xf32, #tpu.memory_space<vmem>>) attributes {dimension_semantics = [#tpu.dimension_semantics<parallel>, #tpu.dimension_semantics<parallel>], iteration_bounds = array<i64: 1, 1>, scalar_prefetch = 0 : i64, scratch_operands = 0 : i64, tpu.core_type = #tpu.core_type<tc>, window_params = [{transform_indices = @transform_0, window_bounds = array<i64: 4, 128>}, {transform_indices = @transform_1, window_bounds = array<i64: 1, 128>}, {transform_indices = @transform_2, window_bounds = array<i64: 1, 128>}, {transform_indices = @transform_3, window_bounds = array<i64: 4, 128>}]} {
    %c0 = arith.constant 0 : index
    %c0_0 = arith.constant 0 : index
    %0 = vector.load %arg2[%c0, %c0_0] : memref<4x128xf32, #tpu.memory_space<vmem>>, vector<4x128xf32>
    %c0_1 = arith.constant 0 : index
    %c0_2 = arith.constant 0 : index
    %1 = vector.load %arg3[%c0_1, %c0_2] : memref<1x128xf32, #tpu.memory_space<vmem>>, vector<1x128xf32>
    %c0_3 = arith.constant 0 : index
    %c0_4 = arith.constant 0 : index
    %2 = vector.load %arg4[%c0_3, %c0_4] : memref<1x128xf32, #tpu.memory_space<vmem>>, vector<1x128xf32>
    %cst = arith.constant 9.99999968E-21 : f32
    %3 = vector.broadcast %cst : f32 to vector<1x128xf32>
    %4 = arith.addf %2, %3 : vector<1x128xf32>
    %cst_5 = arith.constant 1.000000e+00 : f32
    %5 = vector.broadcast %cst_5 : f32 to vector<1x128xf32>
    %6 = arith.divf %5, %4 : vector<1x128xf32>
    %7 = vector.broadcast %1 : vector<1x128xf32> to vector<4x128xf32>
    %8 = arith.subf %0, %7 : vector<4x128xf32>
    %9 = vector.broadcast %6 : vector<1x128xf32> to vector<4x128xf32>
    %10 = arith.mulf %8, %9 : vector<4x128xf32>
    %c0_6 = arith.constant 0 : index
    %c0_7 = arith.constant 0 : index
    %11 = vector.load %arg5[%c0_6, %c0_7] : memref<4x128xf32, #tpu.memory_space<vmem>>, vector<4x128xf32>
    tpu.vector_store %arg5[%c0_6, %c0_7], %10 {strides = array<i32>} : memref<4x128xf32, #tpu.memory_space<vmem>>, vector<4x128xf32>,
    return
  }
  func.func @transform_0(%arg0: i32, %arg1: i32) -> (i32, i32) {
    %c0_i32 = arith.constant 0 : i32
    return %arg0, %arg1 : i32, i32
  }
  func.func @transform_1(%arg0: i32, %arg1: i32) -> (i32, i32) {
    %c0_i32 = arith.constant 0 : i32
    %c0_i32_0 = arith.constant 0 : i32
    return %c0_i32, %arg1 : i32, i32
  }
  func.func @transform_2(%arg0: i32, %arg1: i32) -> (i32, i32) {
    %c0_i32 = arith.constant 0 : i32
    %c0_i32_0 = arith.constant 0 : i32
    return %c0_i32, %arg1 : i32, i32
  }
  func.func @transform_3(%arg0: i32, %arg1: i32) -> (i32, i32) {
    %c0_i32 = arith.constant 0 : i32
    return %arg0, %arg1 : i32, i32
  }
}

</mosaic_0001>

<bundles_post_ra>
// kernel: tpu_custom_call.1
= control target key start
LH: loop header
LB: loop body
LE: loop exit
PB: predicated region body
PF: predicated region fallthrough
CT: control target
= control target key end

     0   :  { %8 = vsyncpa [#allocation3], 0  ;;  %s168_s0 = inlined_call_operand.hbm [shape: f32[4,128], index: 0, kind: input, shape index: {}]   ;;  %s169_s1 = inlined_call_operand.vmem [shape: f32[1,128], index: 1, kind: input, shape index: {}]   ;;  %s170_s2 = inlined_call_operand.vmem [shape: f32[1,128], index: 2, kind: input, shape index: {}]   ;;  %s171_s3 = inlined_call_operand.hbm [shape: f32[4,128], index: 3, kind: output, shape index: {}]  }
   0x1   :  { %9 = vsyncpa [#allocation4], 0  ;;  %s116_s12 = smov [#allocation2]   ;;  %s68_s16 = scalar_lea.hbm %s168_s0, 64 }
   0x2   :  { %s16_s13 = sshll.u32 %s116_s12, 4  ;;  %p69_p0 = scmp.ne.s32.totalorder %s168_s0, %s68_s16  ;;  %s17_s13 = int_to_ptr.vmem [resolvable:$true] %s16_s13 }
   0x3   :  { %p72_p1 = scmp.lt.u32.totalorder %s68_s16, %s168_s0 }
   0x5   :  { %p74_p2 = pnand %p72_p1, %p69_p0 }
   0x7   :  { %77 = shalt.err (!%p74_p2)
}
   0x8   :  { %s78_s21 = scalar_lea.vmem %s17_s13, 64  ;;  %p83_p4 = scmp.lt.s32.totalorder %s17_s13, %s17_s13 }
   0x9   :  { %p79_p3 = scmp.ne.s32.totalorder %s17_s13, %s78_s21  ;;  %p84_p5 = scmp.lt.s32.totalorder %s78_s21, %s78_s21 }
   0xb   :  { %p85_p6 = por %p84_p5, %p83_p4 }
   0xd   :  { %p86_p7 = pnand %p85_p6, %p79_p3 }
   0xf   :  { %89 = shalt.err (!%p86_p7)
}
  0x10   :  { %19 = dma.hbm_to_vmem [thread:$0]  %s168_s0, 64, %s17_s13, [#allocation3]  }
  0x11   :  { %112 = dma.done.wait [#allocation3], 64  }
  0x12   :  { %113 = vsyncadd [#allocation3], 4294967232  ;;  %v29_v0 = vld [vmem:[%s170_s2] sm:$0x1]  ;;  %v41_v2 = vlaneseq  ;;  %s117_s28 = smov [#allocation5]  }
  0x13   :  { %v30_v1 = vadd.f32 1e-20, %v29_v0  ;;  %v27_v4 = vld [vmem:[#allocation2] sm:$0xf]  ;;  %s54_s0 = sshll.u32 %s117_s28, 4  ;;  %s55_s0 = int_to_ptr.vmem [resolvable:$true] %s54_s0 }
  0x14   :  { %v42_v3 = vshrl.u32 %v41_v2, 7  ;;  %v63_v5 = vld [vmem:[%s169_s1] ss:$0 sm:$0xff]  ;;  %s90_s29 = scalar_lea.vmem %s55_s0, 64  ;;  %p95_p9 = scmp.lt.s32.totalorder %s55_s0, %s55_s0 }
  0x15   :  { %66 = vrcp.f32 %v30_v1  ;;  %v39_v7 = vsub.f32 %v27_v4, %v63_v5  ;;  %p91_p8 = scmp.ne.s32.totalorder %s55_s0, %s90_s29  ;;  %p96_p10 = scmp.lt.s32.totalorder %s90_s29, %s90_s29 }
  0x16   :  { %v43_v6 = vsub.s32 0, %v42_v3 }
  0x17   :  { %p97_p11 = por %p96_p10, %p95_p9 }
  0x19   :  { %p98_p12 = pnand %p97_p11, %p91_p8 }
  0x1f   :  { %v67_v8 = vpop.eup %66 }
  0x20   :  { %v44_v9 = vrot.slane %v67_v8, %v43_v6 }
  0x22   :  { %v46_v10 = vmul.f32 %v44_v9, %v39_v7 }
  0x24   :  { %47 = vst [vmem:[#allocation5] sm:$0xf] %v46_v10 }
  0x25   :  { %101 = shalt.err (!%p98_p12)
}
  0x26   :  { %s102_s1 = scalar_lea.hbm %s171_s3, 64 }
  0x27   :  { %p103_p13 = scmp.ne.s32.totalorder %s171_s3, %s102_s1  ;;  %p106_p0 = scmp.lt.u32.totalorder %s102_s1, %s171_s3 }
  0x29   :  { %p108_p1 = pnand %p106_p0, %p103_p13 }
  0x2b   :  { %111 = shalt.err (!%p108_p1)
}
  0x2c   :  { %57 = dma.vmem_to_hbm [thread:$0]  %s55_s0, 64, %s171_s3, [#allocation4]  }
  0x2d   :  { %114 = dma.done.wait [#allocation4], 64  }
  0x2e   :  { %115 = vsyncadd [#allocation4], 4294967232 }
  0x2f   :  { %61 = vsyncpa [#allocation3], 1 }
  0x30   :  { %62 = vsyncpa [#allocation4], 1 }

</bundles_post_ra>
